<compile_context>
chip_gen: v7x
topology: tpu7x:2x2x1
jax: 0.10.0
libtpu: 0.0.40
codegen_flags: <defaults>
</compile_context>

<pallas_src>
import functools
import math

import jax
import jax.numpy as jnp
import numpy as np
from jax.experimental import pallas as pl
from jax.experimental.pallas import tpu as pltpu  # noqa: F401 (used when scaling up)

_BF16 = jnp.bfloat16
_F32 = jnp.float32


def _round8(n):
    return ((n + 7) // 8) * 8


def _layernorm(x, g, b, eps=1e-12):
    mu = jnp.mean(x, axis=-1, keepdims=True)
    var = jnp.mean((x - mu) ** 2, axis=-1, keepdims=True)
    return (x - mu) * jax.lax.rsqrt(var + eps) * g + b


def _gelu(x):
    # TODO(synk): tanh-approx GELU; HF BertModel's default is the erf-based GELU.
    return 0.5 * x * (1.0 + jnp.tanh(0.7978845608028654 * (x + 0.044715 * x * x * x)))


def _fused_forward_kernel(
    x_ref,        # (B*S, E)    f32  text embeddings (word + segment + position)
    mask_ref,     # (B*S, B*S)  f32  block-diagonal additive attention bias
    wqkv_ref,     # (E, 3E)     bf16 packed Q|K|V projection
    wo_ref,       # (E, E)      bf16
    w1_ref,       # (E, F)      bf16
    w2_ref,       # (F, E)      bf16
    patches_ref,  # (KPAD, NPIX) bf16 im2col image (row 9C = ones -> conv bias)
    convw_ref,    # (COUT, KPAD) bf16 conv weight, bias folded into column 9C
    pool_ref,     # (BP, NPIX)  bf16 per-batch global-average-pool matrix
    projw_ref,    # (COUT, HID) bf16
    textw_ref,    # (E, HID)    bf16
    fusew_ref,    # (2*HID, PAD) bf16 (n_class zero-padded to PAD lanes)
    bias_ref,     # (16, PAD)   f32  packed bias / LayerNorm vectors
    o_ref,        # (BP, PAD)   f32  full-tile lane-dense output
    *, n_batch, seq,
):
    BS = x_ref.shape[0]
    E = wqkv_ref.shape[0]
    F = w1_ref.shape[1]
    HID = projw_ref.shape[1]
    BP = pool_ref.shape[0]

    biases = bias_ref[...]
    bqkv = biases[0:1, :3 * E]
    bo = biases[1:2, :E]
    ln1g = biases[2:3, :E]
    ln1b = biases[3:4, :E]
    b1 = biases[4:5, :F]
    b2 = biases[5:6, :E]
    ln2g = biases[6:7, :E]
    ln2b = biases[7:8, :E]
    proj_b = biases[8:9, :HID]
    text_b = biases[9:10, :HID]
    fuse_b = biases[10:11, :]

    # ---- image branch: one K=KPAD conv contraction (bias folded) + ReLU + GAP ----
    conv = jnp.dot(convw_ref[...], patches_ref[...],
                   preferred_element_type=_F32)                       # (COUT, NPIX)
    act = jnp.maximum(conv, 0.0).astype(_BF16)
    # pooled[b, c] = sum_p pool[b, p] * act[c, p]   (contract last dims of both)
    pooled = jax.lax.dot_general(pool_ref[...], act,
                                 (((1,), (1,)), ((), ())),
                                 preferred_element_type=_F32)         # (BP, COUT)
    img_feat = jnp.dot(pooled.astype(_BF16), projw_ref[...],
                       preferred_element_type=_F32) + proj_b          # (BP, HID)

    # ---- text branch: one BERT-style encoder layer, batched over B*S ----
    x = x_ref[...]
    xb = x.astype(_BF16)
    qkv = jnp.dot(xb, wqkv_ref[...], preferred_element_type=_F32) + bqkv   # (BS, 3E)
    q = qkv[:, :E].astype(_BF16)
    k = qkv[:, E:2 * E].astype(_BF16)
    v = qkv[:, 2 * E:].astype(_BF16)
    scale = 1.0 / math.sqrt(E)
    scores = jax.lax.dot_general(q, k, (((1,), (1,)), ((), ())),
                                 preferred_element_type=_F32) * scale
    scores = scores + mask_ref[...]                                        # (BS, BS)
    scores = scores - jnp.max(scores, axis=-1, keepdims=True)
    p = jnp.exp(scores)
    p = p * pl.reciprocal(jnp.sum(p, axis=-1, keepdims=True), approx=True)
    ctx = jnp.dot(p.astype(_BF16), v, preferred_element_type=_F32)         # (BS, E)
    attn = jnp.dot(ctx.astype(_BF16), wo_ref[...],
                   preferred_element_type=_F32) + bo
    h = _layernorm(x + attn, ln1g, ln1b)
    ff = _gelu(jnp.dot(h.astype(_BF16), w1_ref[...],
                       preferred_element_type=_F32) + b1)
    y2 = jnp.dot(ff.astype(_BF16), w2_ref[...], preferred_element_type=_F32) + b2
    out = _layernorm(h + y2, ln2g, ln2b).astype(_BF16)                     # (BS, E)

    # ---- CLS extraction (rows b*S) via one tiny selection matmul ----
    row_ids = jax.lax.broadcasted_iota(jnp.int32, (BP, BS), 0)
    col_ids = jax.lax.broadcasted_iota(jnp.int32, (BP, BS), 1)
    sel = jnp.where((col_ids == row_ids * seq) & (row_ids < n_batch),
                    1.0, 0.0).astype(_BF16)
    cls = jnp.dot(sel, out, preferred_element_type=_F32)                   # (BP, E)

    # ---- fusion head: text_fc + torch.cat + fuse_fc (cat split into Wf halves) ----
    text_feat = jnp.dot(cls.astype(_BF16), textw_ref[...],
                        preferred_element_type=_F32) + text_b              # (BP, HID)
    wf = fusew_ref[...]
    result = (jnp.dot(text_feat.astype(_BF16), wf[:HID, :],
                      preferred_element_type=_F32)
              + jnp.dot(img_feat.astype(_BF16), wf[HID:, :],
                        preferred_element_type=_F32)
              + fuse_b)
    # Single lane-dense full-tile store; wrapper slices [:B, :n_class].
    o_ref[...] = result.astype(o_ref.dtype)


class FusionModelPallas:
    def __init__(self, key, *, vocab=100, seq=8, embedding_dim=32,
                 hidden_dim=32, n_class=16, cin=3, conv_cout=16):
        self.seq = seq
        self.embedding_dim = embedding_dim
        self.hidden_dim = hidden_dim
        self.n_class = n_class
        self.cin = cin
        self.conv_cout = conv_cout

        E, F = embedding_dim, 4 * embedding_dim
        self.ffn_dim = F
        self.PAD = max(128, F)
        self.KPAD = _round8(9 * cin + 1)          # 27 tap*chan cols + 1 bias col
        self.BP = 8                               # output sublane padding
        assert 3 * E <= self.PAD and F <= self.PAD
        assert max(hidden_dim, n_class, conv_cout, E) <= self.PAD

        ks = jax.random.split(key, 16)
        s = 0.02

        # Synthetic BERT embeddings + one encoder layer (BertModel stand-in).
        self.word_emb = jax.random.normal(ks[0], (vocab, E), jnp.float32) * s
        self.seg_emb = jax.random.normal(ks[1], (2, E), jnp.float32) * s
        self.pos_emb = jax.random.normal(ks[2], (seq, E), jnp.float32) * s

        wq = jax.random.normal(ks[3], (E, E), jnp.float32) * s
        wk = jax.random.normal(ks[4], (E, E), jnp.float32) * s
        wv = jax.random.normal(ks[5], (E, E), jnp.float32) * s
        self.wqkv = jnp.concatenate([wq, wk, wv], axis=1).astype(_BF16)    # (E, 3E)
        self.wo = (jax.random.normal(ks[6], (E, E), jnp.float32) * s).astype(_BF16)
        self.w1 = (jax.random.normal(ks[7], (E, F), jnp.float32) * s).astype(_BF16)
        self.w2 = (jax.random.normal(ks[8], (F, E), jnp.float32) * s).astype(_BF16)

        # Synthetic image extractor: 3x3 conv (pad=1) -> ReLU -> GAP -> Linear.
        # Conv weight stored (COUT, KPAD): cols [0, 9C) = tap-major/channel-minor
        # weights, col 9C = conv bias (multiplied by the ones-row of the patches),
        # remaining cols zero (contraction padding).
        conv_w = jax.random.normal(ks[9], (conv_cout, 9 * cin), jnp.float32) * s
        conv_b = jnp.zeros((conv_cout, 1), jnp.float32)
        conv_pad = jnp.zeros((conv_cout, self.KPAD - 9 * cin - 1), jnp.float32)
        self.conv_w_t = jnp.concatenate([conv_w, conv_b, conv_pad],
                                        axis=1).astype(_BF16)              # (COUT, KPAD)
        self.img_proj_w = (jax.random.normal(ks[10], (conv_cout, hidden_dim),
                                             jnp.float32) * s).astype(_BF16)

        # FusionModel heads; fuse_fc output lane-padded to PAD for dense stores.
        self.text_fc_w = (jax.random.normal(ks[11], (E, hidden_dim),
                                            jnp.float32) * s).astype(_BF16)
        fuse_w = jax.random.normal(ks[12], (2 * hidden_dim, n_class), jnp.float32) * s
        self.fuse_fc_w = jnp.pad(
            fuse_w, ((0, 0), (0, self.PAD - n_class))).astype(_BF16)

        # Pack every bias / LayerNorm vector into a single (16, PAD) f32 array.
        zE = np.zeros((E,), np.float32)
        zF = np.zeros((F,), np.float32)
        oE = np.ones((E,), np.float32)
        rows = [
            np.zeros((3 * E,), np.float32),       # 0: bq | bk | bv
            zE,                                   # 1: bo
            oE, zE,                               # 2,3: ln1 gamma / beta
            zF,                                   # 4: b1 (FFN)
            zE,                                   # 5: b2 (FFN)
            oE, zE,                               # 6,7: ln2 gamma / beta
            np.zeros((hidden_dim,), np.float32),  # 8: img_proj bias
            np.zeros((hidden_dim,), np.float32),  # 9: text_fc bias
            np.zeros((n_class,), np.float32),     # 10: fuse_fc bias
        ]
        packed = np.zeros((16, self.PAD), np.float32)
        for i, v in enumerate(rows):
            packed[i, :v.shape[0]] = v
        self.bias_pack = jnp.asarray(packed)

    def __call__(self, tokens, segments, input_masks, image):
        B, S = tokens.shape
        E = self.embedding_dim
        BS = B * S

        # Text embeddings (gather done in XLA; no Pallas win at this size).
        x = (self.word_emb[tokens]
             + self.seg_emb[segments]
             + self.pos_emb[None, :, :]).astype(jnp.float32)          # (B, S, E)
        x2d = x.reshape(BS, E)

        # Block-diagonal additive attention mask: 0 where query/key are in the
        # same batch element and the key token is valid, else -1e9.
        valid = input_masks.astype(jnp.float32)                       # (B, S)
        block = jnp.eye(B, dtype=jnp.float32)                         # (B, B)
        allowed = block[:, None, :, None] * valid[None, None, :, :]   # (B,1,B,S)
        allowed = jnp.broadcast_to(allowed, (B, S, B, S)).reshape(BS, BS)
        attn_bias = (1.0 - allowed) * -1e9                            # (BS, BS)

        # Image im2col, lane-major: (KPAD, B*H*W) bf16, channel/tap on sublanes,
        # pixel on lanes; row 9C is all-ones so the conv bias folds into the matmul.
        _, C, H, W = image.shape
        NPIX = B * H * W
        x_nhwc = jnp.transpose(image, (0, 2, 3, 1))
        xp = jnp.pad(x_nhwc, ((0, 0), (1, 1), (1, 1), (0, 0)))        # (B,H+2,W+2,C)
        taps = []
        for dy in range(3):
            for dx in range(3):
                taps.append(xp[:, dy:dy + H, dx:dx + W, :].reshape(NPIX, C))
        patches = jnp.concatenate(taps, axis=1)                       # (NPIX, 9C)
        patches_t = jnp.transpose(patches)                            # (9C, NPIX)
        ones_row = jnp.ones((1, NPIX), jnp.float32)
        pad_rows = jnp.zeros((self.KPAD - 9 * C - 1, NPIX), jnp.float32)
        patches_t = jnp.concatenate([patches_t, ones_row, pad_rows],
                                    axis=0).astype(_BF16)             # (KPAD, NPIX)

        # Global-average-pool matrix: row b has 1/(H*W) over batch b's pixels.
        pool = np.zeros((self.BP, NPIX), np.float32)
        inv = 1.0 / float(H * W)
        for b in range(B):
            pool[b, b * H * W:(b + 1) * H * W] = inv
        pool = jnp.asarray(pool, _BF16)

        kernel = functools.partial(_fused_forward_kernel, n_batch=B, seq=S)
        out = pl.pallas_call(
            kernel,
            out_shape=jax.ShapeDtypeStruct((self.BP, self.PAD), jnp.float32),
        )(x2d, attn_bias, self.wqkv, self.wo, self.w1, self.w2,
          patches_t, self.conv_w_t, pool, self.img_proj_w, self.text_fc_w,
          self.fuse_fc_w, self.bias_pack)
        return out[:B, :self.n_class]


if __name__ == "__main__":
    key = jax.random.PRNGKey(0)
    k_model, k_tok, k_seg, k_img = jax.random.split(key, 4)

    B, S = 2, 8
    model = FusionModelPallas(k_model, vocab=100, seq=S, embedding_dim=32,
                              hidden_dim=32, n_class=16, cin=3, conv_cout=16)

    tokens = jax.random.randint(k_tok, (B, S), 0, 100, dtype=jnp.int32)
    segments = jax.random.randint(k_seg, (B, S), 0, 2, dtype=jnp.int32)
    input_masks = jnp.ones((B, S), jnp.int32).at[0, -2:].set(0)
    image = jax.random.normal(k_img, (B, 3, 16, 16), jnp.float32)

    forward = jax.jit(model.__call__)
    hash_value = forward(tokens, segments, input_masks, image)
    jax.block_until_ready(hash_value)
    assert hash_value.shape == (B, 16)
    print("KERNEL_OK")
</pallas_src>

<mosaic_0001>
module attributes {stable_mosaic.version = 11 : i64} {
  func.func @_fused_forward_kernel(%arg0: memref<16x32xf32, #tpu.memory_space<vmem>>, %arg1: memref<16x16xf32, #tpu.memory_space<vmem>>, %arg2: memref<32x96xbf16, #tpu.memory_space<vmem>>, %arg3: memref<32x32xbf16, #tpu.memory_space<vmem>>, %arg4: memref<32x128xbf16, #tpu.memory_space<vmem>>, %arg5: memref<128x32xbf16, #tpu.memory_space<vmem>>, %arg6: memref<32x512xbf16, #tpu.memory_space<vmem>>, %arg7: memref<16x32xbf16, #tpu.memory_space<vmem>>, %arg8: memref<8x512xbf16, #tpu.memory_space<vmem>>, %arg9: memref<16x32xbf16, #tpu.memory_space<vmem>>, %arg10: memref<32x32xbf16, #tpu.memory_space<vmem>>, %arg11: memref<64x128xbf16, #tpu.memory_space<vmem>>, %arg12: memref<16x128xf32, #tpu.memory_space<vmem>>, %arg13: memref<8x128xf32, #tpu.memory_space<vmem>>) attributes {dimension_semantics = [], scalar_prefetch = 0 : i64, scratch_operands = 0 : i64, tpu.core_type = #tpu.core_type<tc>} {
    %c0 = arith.constant 0 : index
    %c0_0 = arith.constant 0 : index
    %0 = vector.load %arg12[%c0, %c0_0] : memref<16x128xf32, #tpu.memory_space<vmem>>, vector<16x128xf32>
    %1 = vector.extract_strided_slice %0 {offsets = [0, 0], sizes = [1, 96], strides = [1, 1]} : vector<16x128xf32> to vector<1x96xf32>
    %2 = vector.extract_strided_slice %0 {offsets = [1, 0], sizes = [1, 32], strides = [1, 1]} : vector<16x128xf32> to vector<1x32xf32>
    %3 = vector.extract_strided_slice %0 {offsets = [2, 0], sizes = [1, 32], strides = [1, 1]} : vector<16x128xf32> to vector<1x32xf32>
    %4 = vector.extract_strided_slice %0 {offsets = [3, 0], sizes = [1, 32], strides = [1, 1]} : vector<16x128xf32> to vector<1x32xf32>
    %5 = vector.extract_strided_slice %0 {offsets = [4, 0], sizes = [1, 128], strides = [1, 1]} : vector<16x128xf32> to vector<1x128xf32>
    %6 = vector.extract_strided_slice %0 {offsets = [5, 0], sizes = [1, 32], strides = [1, 1]} : vector<16x128xf32> to vector<1x32xf32>
    %7 = vector.extract_strided_slice %0 {offsets = [6, 0], sizes = [1, 32], strides = [1, 1]} : vector<16x128xf32> to vector<1x32xf32>
    %8 = vector.extract_strided_slice %0 {offsets = [7, 0], sizes = [1, 32], strides = [1, 1]} : vector<16x128xf32> to vector<1x32xf32>
    %9 = vector.extract_strided_slice %0 {offsets = [8, 0], sizes = [1, 32], strides = [1, 1]} : vector<16x128xf32> to vector<1x32xf32>
    %10 = vector.extract_strided_slice %0 {offsets = [9, 0], sizes = [1, 32], strides = [1, 1]} : vector<16x128xf32> to vector<1x32xf32>
    %11 = vector.extract_strided_slice %0 {offsets = [10, 0], sizes = [1, 128], strides = [1, 1]} : vector<16x128xf32> to vector<1x128xf32>
    %c0_1 = arith.constant 0 : index
    %c0_2 = arith.constant 0 : index
    %12 = vector.load %arg7[%c0_1, %c0_2] : memref<16x32xbf16, #tpu.memory_space<vmem>>, vector<16x32xbf16>
    %c0_3 = arith.constant 0 : index
    %c0_4 = arith.constant 0 : index
    %13 = vector.load %arg6[%c0_3, %c0_4] : memref<32x512xbf16, #tpu.memory_space<vmem>>, vector<32x512xbf16>
    %cst = arith.constant dense<0.000000e+00> : vector<16x512xf32>
    %14 = tpu.matmul %12, %13, %cst {dimension_numbers = #tpu.dot_dimension_numbers<[1], [0], [0], [1], [0, 0, 1, 1], [], []>} : vector<16x32xbf16>, vector<32x512xbf16>, vector<16x512xf32> -> vector<16x512xf32>
    %cst_5 = arith.constant 0.000000e+00 : f32
    %15 = vector.broadcast %cst_5 : f32 to vector<16x512xf32>
    %16 = arith.maximumf %14, %15 : vector<16x512xf32>
    %17 = arith.truncf %16 : vector<16x512xf32> to vector<16x512xbf16>
    %c0_6 = arith.constant 0 : index
    %c0_7 = arith.constant 0 : index
    %18 = vector.load %arg8[%c0_6, %c0_7] : memref<8x512xbf16, #tpu.memory_space<vmem>>, vector<8x512xbf16>
    %cst_8 = arith.constant dense<0.000000e+00> : vector<8x16xf32>
    %19 = tpu.matmul %18, %17, %cst_8 {dimension_numbers = #tpu.dot_dimension_numbers<[1], [1], [0], [0], [0, 0, 1, 0], [], []>} : vector<8x512xbf16>, vector<16x512xbf16>, vector<8x16xf32> -> vector<8x16xf32>
    %20 = arith.truncf %19 : vector<8x16xf32> to vector<8x16xbf16>
    %c0_9 = arith.constant 0 : index
    %c0_10 = arith.constant 0 : index
    %21 = vector.load %arg9[%c0_9, %c0_10] : memref<16x32xbf16, #tpu.memory_space<vmem>>, vector<16x32xbf16>
    %cst_11 = arith.constant dense<0.000000e+00> : vector<8x32xf32>
    %22 = tpu.matmul %20, %21, %cst_11 {dimension_numbers = #tpu.dot_dimension_numbers<[1], [0], [0], [1], [0, 0, 1, 1], [], []>} : vector<8x16xbf16>, vector<16x32xbf16>, vector<8x32xf32> -> vector<8x32xf32>
    %23 = vector.broadcast %9 : vector<1x32xf32> to vector<8x32xf32>
    %24 = arith.addf %22, %23 : vector<8x32xf32>
    %c0_12 = arith.constant 0 : index
    %c0_13 = arith.constant 0 : index
    %25 = vector.load %arg0[%c0_12, %c0_13] : memref<16x32xf32, #tpu.memory_space<vmem>>, vector<16x32xf32>
    %26 = arith.truncf %25 : vector<16x32xf32> to vector<16x32xbf16>
    %c0_14 = arith.constant 0 : index
    %c0_15 = arith.constant 0 : index
    %27 = vector.load %arg2[%c0_14, %c0_15] : memref<32x96xbf16, #tpu.memory_space<vmem>>, vector<32x96xbf16>
    %cst_16 = arith.constant dense<0.000000e+00> : vector<16x96xf32>
    %28 = tpu.matmul %26, %27, %cst_16 {dimension_numbers = #tpu.dot_dimension_numbers<[1], [0], [0], [1], [0, 0, 1, 1], [], []>} : vector<16x32xbf16>, vector<32x96xbf16>, vector<16x96xf32> -> vector<16x96xf32>
    %29 = vector.broadcast %1 : vector<1x96xf32> to vector<16x96xf32>
    %30 = arith.addf %28, %29 : vector<16x96xf32>
    %31 = vector.extract_strided_slice %30 {offsets = [0, 0], sizes = [16, 32], strides = [1, 1]} : vector<16x96xf32> to vector<16x32xf32>
    %32 = arith.truncf %31 : vector<16x32xf32> to vector<16x32xbf16>
    %33 = vector.extract_strided_slice %30 {offsets = [0, 32], sizes = [16, 32], strides = [1, 1]} : vector<16x96xf32> to vector<16x32xf32>
    %34 = arith.truncf %33 : vector<16x32xf32> to vector<16x32xbf16>
    %35 = vector.extract_strided_slice %30 {offsets = [0, 64], sizes = [16, 32], strides = [1, 1]} : vector<16x96xf32> to vector<16x32xf32>
    %36 = arith.truncf %35 : vector<16x32xf32> to vector<16x32xbf16>
    %cst_17 = arith.constant dense<0.000000e+00> : vector<16x16xf32>
    %37 = tpu.matmul %32, %34, %cst_17 {dimension_numbers = #tpu.dot_dimension_numbers<[1], [1], [0], [0], [0, 0, 1, 0], [], []>} : vector<16x32xbf16>, vector<16x32xbf16>, vector<16x16xf32> -> vector<16x16xf32>
    %cst_18 = arith.constant 0.176776692 : f32
    %38 = vector.broadcast %cst_18 : f32 to vector<16x16xf32>
    %39 = arith.mulf %37, %38 : vector<16x16xf32>
    %c0_19 = arith.constant 0 : index
    %c0_20 = arith.constant 0 : index
    %40 = vector.load %arg1[%c0_19, %c0_20] : memref<16x16xf32, #tpu.memory_space<vmem>>, vector<16x16xf32>
    %41 = arith.addf %39, %40 : vector<16x16xf32>
    %cst_21 = arith.constant dense<0xFF800000> : vector<16xf32>
    %42 = vector.multi_reduction <maximumf>, %41, %cst_21 [1] : vector<16x16xf32> to vector<16xf32>
    %43 = vector.shape_cast %42 : vector<16xf32> to vector<16x1xf32>
    %44 = vector.broadcast %43 : vector<16x1xf32> to vector<16x16xf32>
    %45 = arith.subf %41, %44 : vector<16x16xf32>
    %46 = math.exp %45 : vector<16x16xf32>
    %cst_22 = arith.constant dense<0.000000e+00> : vector<16xf32>
    %47 = vector.multi_reduction <add>, %46, %cst_22 [1] : vector<16x16xf32> to vector<16xf32>
    %48 = vector.shape_cast %47 : vector<16xf32> to vector<16x1xf32>
    %49 = tpu.reciprocal %48 {approx = true} : vector<16x1xf32> -> vector<16x1xf32>
    %50 = vector.broadcast %49 : vector<16x1xf32> to vector<16x16xf32>
    %51 = arith.mulf %46, %50 : vector<16x16xf32>
    %52 = arith.truncf %51 : vector<16x16xf32> to vector<16x16xbf16>
    %cst_23 = arith.constant dense<0.000000e+00> : vector<16x32xf32>
    %53 = tpu.matmul %52, %36, %cst_23 {dimension_numbers = #tpu.dot_dimension_numbers<[1], [0], [0], [1], [0, 0, 1, 1], [], []>} : vector<16x16xbf16>, vector<16x32xbf16>, vector<16x32xf32> -> vector<16x32xf32>
    %54 = arith.truncf %53 : vector<16x32xf32> to vector<16x32xbf16>
    %c0_24 = arith.constant 0 : index
    %c0_25 = arith.constant 0 : index
    %55 = vector.load %arg3[%c0_24, %c0_25] : memref<32x32xbf16, #tpu.memory_space<vmem>>, vector<32x32xbf16>
    %cst_26 = arith.constant dense<0.000000e+00> : vector<16x32xf32>
    %56 = tpu.matmul %54, %55, %cst_26 {dimension_numbers = #tpu.dot_dimension_numbers<[1], [0], [0], [1], [0, 0, 1, 1], [], []>} : vector<16x32xbf16>, vector<32x32xbf16>, vector<16x32xf32> -> vector<16x32xf32>
    %57 = vector.broadcast %2 : vector<1x32xf32> to vector<16x32xf32>
    %58 = arith.addf %56, %57 : vector<16x32xf32>
    %59 = arith.addf %25, %58 : vector<16x32xf32>
    %cst_27 = arith.constant dense<0.000000e+00> : vector<16xf32>
    %60 = vector.multi_reduction <add>, %59, %cst_27 [1] : vector<16x32xf32> to vector<16xf32>
    %61 = vector.shape_cast %60 : vector<16xf32> to vector<16x1xf32>
    %cst_28 = arith.constant 3.200000e+01 : f32
    %62 = vector.broadcast %cst_28 : f32 to vector<16x1xf32>
    %63 = arith.divf %61, %62 : vector<16x1xf32>
    %64 = vector.broadcast %63 : vector<16x1xf32> to vector<16x32xf32>
    %65 = arith.subf %59, %64 : vector<16x32xf32>
    %66 = arith.mulf %65, %65 : vector<16x32xf32>
    %cst_29 = arith.constant dense<0.000000e+00> : vector<16xf32>
    %67 = vector.multi_reduction <add>, %66, %cst_29 [1] : vector<16x32xf32> to vector<16xf32>
    %68 = vector.shape_cast %67 : vector<16xf32> to vector<16x1xf32>
    %cst_30 = arith.constant 3.200000e+01 : f32
    %69 = vector.broadcast %cst_30 : f32 to vector<16x1xf32>
    %70 = arith.divf %68, %69 : vector<16x1xf32>
    %71 = vector.broadcast %63 : vector<16x1xf32> to vector<16x32xf32>
    %72 = arith.subf %59, %71 : vector<16x32xf32>
    %cst_31 = arith.constant 9.99999996E-13 : f32
    %73 = vector.broadcast %cst_31 : f32 to vector<16x1xf32>
    %74 = arith.addf %70, %73 : vector<16x1xf32>
    %75 = math.rsqrt %74 : vector<16x1xf32>
    %76 = vector.broadcast %75 : vector<16x1xf32> to vector<16x32xf32>
    %77 = arith.mulf %72, %76 : vector<16x32xf32>
    %78 = vector.broadcast %3 : vector<1x32xf32> to vector<16x32xf32>
    %79 = arith.mulf %77, %78 : vector<16x32xf32>
    %80 = vector.broadcast %4 : vector<1x32xf32> to vector<16x32xf32>
    %81 = arith.addf %79, %80 : vector<16x32xf32>
    %82 = arith.truncf %81 : vector<16x32xf32> to vector<16x32xbf16>
    %c0_32 = arith.constant 0 : index
    %c0_33 = arith.constant 0 : index
    %83 = vector.load %arg4[%c0_32, %c0_33] : memref<32x128xbf16, #tpu.memory_space<vmem>>, vector<32x128xbf16>
    %cst_34 = arith.constant dense<0.000000e+00> : vector<16x128xf32>
    %84 = tpu.matmul %82, %83, %cst_34 {dimension_numbers = #tpu.dot_dimension_numbers<[1], [0], [0], [1], [0, 0, 1, 1], [], []>} : vector<16x32xbf16>, vector<32x128xbf16>, vector<16x128xf32> -> vector<16x128xf32>
    %85 = vector.broadcast %5 : vector<1x128xf32> to vector<16x128xf32>
    %86 = arith.addf %84, %85 : vector<16x128xf32>
    %cst_35 = arith.constant 5.000000e-01 : f32
    %87 = vector.broadcast %cst_35 : f32 to vector<16x128xf32>
    %88 = arith.mulf %87, %86 : vector<16x128xf32>
    %cst_36 = arith.constant 4.471500e-02 : f32
    %89 = vector.broadcast %cst_36 : f32 to vector<16x128xf32>
    %90 = arith.mulf %89, %86 : vector<16x128xf32>
    %91 = arith.mulf %90, %86 : vector<16x128xf32>
    %92 = arith.mulf %91, %86 : vector<16x128xf32>
    %93 = arith.addf %86, %92 : vector<16x128xf32>
    %cst_37 = arith.constant 0.797884583 : f32
    %94 = vector.broadcast %cst_37 : f32 to vector<16x128xf32>
    %95 = arith.mulf %94, %93 : vector<16x128xf32>
    %96 = math.tanh %95 : vector<16x128xf32>
    %cst_38 = arith.constant 1.000000e+00 : f32
    %97 = vector.broadcast %cst_38 : f32 to vector<16x128xf32>
    %98 = arith.addf %97, %96 : vector<16x128xf32>
    %99 = arith.mulf %88, %98 : vector<16x128xf32>
    %100 = arith.truncf %99 : vector<16x128xf32> to vector<16x128xbf16>
    %c0_39 = arith.constant 0 : index
    %c0_40 = arith.constant 0 : index
    %101 = vector.load %arg5[%c0_39, %c0_40] : memref<128x32xbf16, #tpu.memory_space<vmem>>, vector<128x32xbf16>
    %cst_41 = arith.constant dense<0.000000e+00> : vector<16x32xf32>
    %102 = tpu.matmul %100, %101, %cst_41 {dimension_numbers = #tpu.dot_dimension_numbers<[1], [0], [0], [1], [0, 0, 1, 1], [], []>} : vector<16x128xbf16>, vector<128x32xbf16>, vector<16x32xf32> -> vector<16x32xf32>
    %103 = vector.broadcast %6 : vector<1x32xf32> to vector<16x32xf32>
    %104 = arith.addf %102, %103 : vector<16x32xf32>
    %105 = arith.addf %81, %104 : vector<16x32xf32>
    %cst_42 = arith.constant dense<0.000000e+00> : vector<16xf32>
    %106 = vector.multi_reduction <add>, %105, %cst_42 [1] : vector<16x32xf32> to vector<16xf32>
    %107 = vector.shape_cast %106 : vector<16xf32> to vector<16x1xf32>
    %cst_43 = arith.constant 3.200000e+01 : f32
    %108 = vector.broadcast %cst_43 : f32 to vector<16x1xf32>
    %109 = arith.divf %107, %108 : vector<16x1xf32>
    %110 = vector.broadcast %109 : vector<16x1xf32> to vector<16x32xf32>
    %111 = arith.subf %105, %110 : vector<16x32xf32>
    %112 = arith.mulf %111, %111 : vector<16x32xf32>
    %cst_44 = arith.constant dense<0.000000e+00> : vector<16xf32>
    %113 = vector.multi_reduction <add>, %112, %cst_44 [1] : vector<16x32xf32> to vector<16xf32>
    %114 = vector.shape_cast %113 : vector<16xf32> to vector<16x1xf32>
    %cst_45 = arith.constant 3.200000e+01 : f32
    %115 = vector.broadcast %cst_45 : f32 to vector<16x1xf32>
    %116 = arith.divf %114, %115 : vector<16x1xf32>
    %117 = vector.broadcast %109 : vector<16x1xf32> to vector<16x32xf32>
    %118 = arith.subf %105, %117 : vector<16x32xf32>
    %cst_46 = arith.constant 9.99999996E-13 : f32
    %119 = vector.broadcast %cst_46 : f32 to vector<16x1xf32>
    %120 = arith.addf %116, %119 : vector<16x1xf32>
    %121 = math.rsqrt %120 : vector<16x1xf32>
    %122 = vector.broadcast %121 : vector<16x1xf32> to vector<16x32xf32>
    %123 = arith.mulf %118, %122 : vector<16x32xf32>
    %124 = vector.broadcast %7 : vector<1x32xf32> to vector<16x32xf32>
    %125 = arith.mulf %123, %124 : vector<16x32xf32>
    %126 = vector.broadcast %8 : vector<1x32xf32> to vector<16x32xf32>
    %127 = arith.addf %125, %126 : vector<16x32xf32>
    %128 = arith.truncf %127 : vector<16x32xf32> to vector<16x32xbf16>
    %129 = tpu.iota {dimensions = array<i32: 0>} : vector<8x16xi32>
    %130 = tpu.iota {dimensions = array<i32: 1>} : vector<8x16xi32>
    %c8_i32 = arith.constant 8 : i32
    %131 = vector.broadcast %c8_i32 : i32 to vector<8x16xi32>
    %132 = arith.muli %129, %131 : vector<8x16xi32>
    %133 = arith.cmpi eq, %130, %132 : vector<8x16xi32>
    %c2_i32 = arith.constant 2 : i32
    %134 = vector.broadcast %c2_i32 : i32 to vector<8x16xi32>
    %135 = arith.cmpi slt, %129, %134 : vector<8x16xi32>
    %136 = arith.andi %133, %135 : vector<8x16xi1>
    %cst_47 = arith.constant 1.000000e+00 : f32
    %cst_48 = arith.constant 0.000000e+00 : f32
    %137 = vector.broadcast %cst_47 : f32 to vector<8x16xf32>
    %138 = vector.broadcast %cst_48 : f32 to vector<8x16xf32>
    %139 = arith.select %136, %137, %138 : vector<8x16xi1>, vector<8x16xf32>
    %140 = arith.truncf %139 : vector<8x16xf32> to vector<8x16xbf16>
    %cst_49 = arith.constant dense<0.000000e+00> : vector<8x32xf32>
    %141 = tpu.matmul %140, %128, %cst_49 {dimension_numbers = #tpu.dot_dimension_numbers<[1], [0], [0], [1], [0, 0, 1, 1], [], []>} : vector<8x16xbf16>, vector<16x32xbf16>, vector<8x32xf32> -> vector<8x32xf32>
    %142 = arith.truncf %141 : vector<8x32xf32> to vector<8x32xbf16>
    %c0_50 = arith.constant 0 : index
    %c0_51 = arith.constant 0 : index
    %143 = vector.load %arg10[%c0_50, %c0_51] : memref<32x32xbf16, #tpu.memory_space<vmem>>, vector<32x32xbf16>
    %cst_52 = arith.constant dense<0.000000e+00> : vector<8x32xf32>
    %144 = tpu.matmul %142, %143, %cst_52 {dimension_numbers = #tpu.dot_dimension_numbers<[1], [0], [0], [1], [0, 0, 1, 1], [], []>} : vector<8x32xbf16>, vector<32x32xbf16>, vector<8x32xf32> -> vector<8x32xf32>
    %145 = vector.broadcast %10 : vector<1x32xf32> to vector<8x32xf32>
    %146 = arith.addf %144, %145 : vector<8x32xf32>
    %c0_53 = arith.constant 0 : index
    %c0_54 = arith.constant 0 : index
    %147 = vector.load %arg11[%c0_53, %c0_54] : memref<64x128xbf16, #tpu.memory_space<vmem>>, vector<64x128xbf16>
    %148 = arith.truncf %146 : vector<8x32xf32> to vector<8x32xbf16>
    %149 = vector.extract_strided_slice %147 {offsets = [0, 0], sizes = [32, 128], strides = [1, 1]} : vector<64x128xbf16> to vector<32x128xbf16>
    %cst_55 = arith.constant dense<0.000000e+00> : vector<8x128xf32>
    %150 = tpu.matmul %148, %149, %cst_55 {dimension_numbers = #tpu.dot_dimension_numbers<[1], [0], [0], [1], [0, 0, 1, 1], [], []>} : vector<8x32xbf16>, vector<32x128xbf16>, vector<8x128xf32> -> vector<8x128xf32>
    %151 = arith.truncf %24 : vector<8x32xf32> to vector<8x32xbf16>
    %152 = vector.extract_strided_slice %147 {offsets = [32, 0], sizes = [32, 128], strides = [1, 1]} : vector<64x128xbf16> to vector<32x128xbf16>
    %cst_56 = arith.constant dense<0.000000e+00> : vector<8x128xf32>
    %153 = tpu.matmul %151, %152, %cst_56 {dimension_numbers = #tpu.dot_dimension_numbers<[1], [0], [0], [1], [0, 0, 1, 1], [], []>} : vector<8x32xbf16>, vector<32x128xbf16>, vector<8x128xf32> -> vector<8x128xf32>
    %154 = arith.addf %150, %153 : vector<8x128xf32>
    %155 = vector.broadcast %11 : vector<1x128xf32> to vector<8x128xf32>
    %156 = arith.addf %154, %155 : vector<8x128xf32>
    %c0_57 = arith.constant 0 : index
    %c0_58 = arith.constant 0 : index
    %157 = vector.load %arg13[%c0_57, %c0_58] : memref<8x128xf32, #tpu.memory_space<vmem>>, vector<8x128xf32>
    tpu.vector_store %arg13[%c0_57, %c0_58], %156 {strides = array<i32>} : memref<8x128xf32, #tpu.memory_space<vmem>>, vector<8x128xf32>,
    return
  }
}

</mosaic_0001>

<bundles_post_ra>
// kernel: a_call__.1
= control target key start
LH: loop header
LB: loop body
LE: loop exit
PB: predicated region body
PF: predicated region fallthrough
CT: control target
= control target key end

     0   :  { %v1378_v1 = vmov 0   ;;  %vm102_vm0 = vcmask 261120   ;;  %v1379_v12 = vmov 0.0   ;;  %vm1380_vm1 = vmmov 0   ;;  %s1381_s19 = smov 96   ;;  %s1697_s6 = inlined_call_operand.vmem [shape: bf16[32,512], index: 6, kind: input, shape index: {}]   ;;  %s1698_s7 = inlined_call_operand.vmem [shape: bf16[16,32], index: 7, kind: input, shape index: {}]   ;;  %s1699_s8 = inlined_call_operand.vmem [shape: bf16[8,512], index: 8, kind: input, shape index: {}]   ;;  %s1700_s9 = inlined_call_operand.vmem [shape: bf16[16,32], index: 9, kind: input, shape index: {}]   ;;  %s1701_s2 = inlined_call_operand.vmem [shape: bf16[32,96], index: 2, kind: input, shape index: {}]   ;;  %s1702_s0 = inlined_call_operand.vmem [shape: f32[16,32], index: 0, kind: input, shape index: {}]   ;;  %s1703_s12 = inlined_call_operand.vmem [shape: f32[16,128], index: 12, kind: input, shape index: {}]   ;;  %s1704_s1 = inlined_call_operand.vmem [shape: f32[16,16], index: 1, kind: input, shape index: {}]   ;;  %s1705_s3 = inlined_call_operand.vmem [shape: bf16[32,32], index: 3, kind: input, shape index: {}]   ;;  %s1706_s4 = inlined_call_operand.vmem [shape: bf16[32,128], index: 4, kind: input, shape index: {}]   ;;  %s1707_s5 = inlined_call_operand.vmem [shape: bf16[128,32], index: 5, kind: input, shape index: {}]   ;;  %s1708_s10 = inlined_call_operand.vmem [shape: bf16[32,32], index: 10, kind: input, shape index: {}]   ;;  %s1709_s11 = inlined_call_operand.vmem [shape: bf16[64,128], index: 11, kind: input, shape index: {}]   ;;  %s1710_s13 = inlined_call_operand.vmem [shape: f32[8,128], index: 13, kind: output, shape index: {}]  }
   0x1   :  { %v1320_v0 = vld [vmem:[%s1697_s6 + $0x4] ss:$16 sps:$4 sm:$0xff]   ;;  %138 = vmatprep.mubr.bf16.mxu0 %v1378_v1  ;;  %181 = vmatprep.mubr.bf16.mxu1 %v1378_v1  ;;  %v1322_v2 = vld [vmem:[%s1697_s6] ss:$16 sps:$4 sm:$0xff]   ;;  %v1327_v5 = vld [vmem:[%s1697_s6 + $0xc] ss:$16 sps:$4 sm:$0xff]   ;;  %v303_v48 = vlaneseq }
   0x2   :  { %106 = vmatprep.subr.bf16.mxu0 %v1320_v0  ;;  %v1323_v3 = vld [vmem:[%s1697_s6 + $0x24] ss:$16 sps:$4 sm:$0xff]   ;;  %v1325_v4 = vld [vmem:[%s1697_s6 + $0x20] ss:$16 sps:$4 sm:$0xff]   ;;  %v1329_v6 = vld [vmem:[%s1697_s6 + $0x8] ss:$16 sps:$4 sm:$0xff]   ;;  %149 = vmatprep.subr.bf16.mxu1 %v1327_v5 }
   0x3   :  { %107 = vmatpush1.bf16.msra.mxu0 %v1322_v2  ;;  %v1330_v7 = vld [vmem:[%s1697_s6 + $0x2c] ss:$16 sps:$4 sm:$0xff]   ;;  %v1326_v8 = vld [vmem:[%s1698_s7] sm:$0xff]   ;;  %150 = vmatpush1.bf16.msra.mxu1 %v1329_v6  ;;  %v1332_v9 = vld [vmem:[%s1697_s6 + $0x28] ss:$16 sps:$4 sm:$0xff]   ;;  %vm313_vm2 = vcmask 130048  }
   0x4   :  { %108 = vmatprep.subr.bf16.mxu0 %v1323_v3  ;;  %151 = vmatprep.subr.bf16.mxu1 %v1330_v7  ;;  %v204_v10 = vld [vmem:[%s1699_s8] sm:$0xff]  ;;  %v205_v33 = vld [vmem:[%s1699_s8 + $0x8] sm:$0xff]  ;;  %v1527_v50 = vshrl.u32 %v303_v48, 7 }
   0x5   :  { %v1150_v11 = vcombine.high %v204_v10, %v204_v10  ;;  %v1149_v34 = vcombine.low %v204_v10, %v204_v10  ;;  %v1152_v35 = vcombine.high %v205_v33, %v205_v33  ;;  %v1151_v36 = vcombine.low %v205_v33, %v205_v33  ;;  %v1337_v37 = vld [vmem:[%s1700_s9] sm:$0xff]   ;;  %v1339_v44 = vld [vmem:[%s1701_s2 + $0x8] sm:$0xff]  }
   0x6   :  { %v1338_v39 = vld [vmem:[%s1701_s2] sm:$0xff]   ;;  %v1515_v46 = vld [vmem:[%s1702_s0 + $0x8] sm:$0xff]  ;;  %v305_v55 = vsub.s32 0, %v1527_v50  ;;  %vm897_vm4 = vcmp.lt.s32.totalorder %v1527_v50, 2 }
   0x7   :  { %109 = vmatpush1.bf16.msra.mxu0 %v1325_v4  ;;  %152 = vmatpush1.bf16.msra.mxu1 %v1332_v9  ;;  %v1510_v45 = vld [vmem:[%s1702_s0] sm:$0xff]  ;;  %v478_v7 = vld [vmem:[%s1704_s1 + $0x8] sm:$0xff] }
   0x8   :  { %1219 = vmatprep.subr.bf16.mxu1 %v1379_v12  ;;  %v359_v47 = vpack.c.bf16 %v1515_v46, %v1510_v45  ;;  %v1532_v54 = vld [vmem:[%s1703_s12] sm:$0xff] }
   0x9   :  { %v367_v56 = vrot.slane %v1532_v54, %v305_v55  ;;  %v477_v3 = vld [vmem:[%s1704_s1] sm:$0xff]  ;;  %s1382_s1 = smov 64  }
   0xa   :  { %1147 = vmatmul.mubr.msk.bf16.vlgmr.msra.gmra.mrb[0].mxu0 %vm102_vm0, %v1326_v8  ;;  %1148 = vmatmul.mubr.msk.bf16.vlgmr.msra.gmra.mrb[0].mxu1 %vm102_vm0, %v1326_v8 }
   0xb   :  { %252 = vmatprep.mubr.bf16.mxu0 %v1150_v11  ;;  %1220 = vmatpush3.bf16.msra.mxu1 %v1337_v37 }
   0xc   :  { %1225 = vmatprep.subr.bf16.mxu1 %v1379_v12  ;;  %1221 = vmatprep.mubr.msk.bf16.mxu1 %vm1380_vm1, %v1379_v12 }
  0xdd   :  { %v140_v13 = vpop.f32.mrb[0].mxu0  ;;  %v183_v21 = vpop.f32.mrb[0].mxu1 }
  0xde   :  { %v142_v14 = vpop.f32.mrb[1].mxu0  ;;  %v192_v16 = vmax.f32 %v140_v13, 0.0  ;;  %v194_v23 = vmax.f32 %v183_v21, 0.0  ;;  %v185_v24 = vpop.f32.mrb[1].mxu1 }
  0xdf   :  { %v144_v15 = vpop.f32.mrb[2].mxu0  ;;  %v193_v19 = vmax.f32 %v142_v14, 0.0  ;;  %v195_v26 = vmax.f32 %v185_v24, 0.0  ;;  %v187_v27 = vpop.f32.mrb[2].mxu1 }
  0xe0   :  { %v196_v17 = vmax.f32 %v144_v15, 0.0  ;;  %v146_v18 = vpop.f32.mrb[3].mxu0  ;;  %v198_v28 = vmax.f32 %v187_v27, 0.0  ;;  %v189_v29 = vpop.f32.mrb[3].mxu1 }
  0xe1   :  { %v197_v20 = vmax.f32 %v146_v18, 0.0  ;;  %v199_v30 = vmax.f32 %v189_v29, 0.0 }
  0xe2   :  { %v200_v22 = vpack.c.bf16 %v196_v17, %v192_v16  ;;  %v202_v31 = vpack.c.bf16 %v198_v28, %v194_v23 }
  0xe3   :  { %v201_v25 = vpack.c.bf16 %v197_v20, %v193_v19  ;;  %v203_v32 = vpack.c.bf16 %v199_v30, %v195_v26 }
  0xe5   :  { %220 = vmatprep.subr.bf16.mxu0 %v201_v25  ;;  %v1340_v25 = vld [vmem:[%s1705_s3] sm:$0xff]  }
  0xe6   :  { %221 = vmatpush1.bf16.xpose.msra.mxu0 %v200_v22 }
  0xe7   :  { %260 = vmatprep.subr.bf16.mxu0 %v203_v32 }
  0xed   :  { %253 = vmatmul.mubr.bf16.vlgmr.msra.gmra.mrb[4].mxu0 %v1149_v34  ;;  %v1341_v34 = vld [vmem:[%s1705_s3 + $0x8] sm:$0xff]  }
  0xee   :  { %261 = vmatpush1.bf16.xpose.msra.mxu0 %v202_v31  ;;  %292 = vmatprep.mubr.bf16.mxu0 %v1152_v35 }
  0xef   :  { %1233 = vmatprep.subr.bf16.mxu0 %v1379_v12 }
  0xf9   :  { %293 = vmatmul.mubr.bf16.vlgmr.msra.gmra.mrb[4].mxu0 %v1151_v36 }
  0xfa   :  { %1235 = vmatprep.mubr.msk.bf16.mxu0 %vm1380_vm1, %v1379_v12 }
 0x1cc   :  { %v294_v38 = vpop.f32.mrb[4].mxu0 }
 0x1cd   :  { %v300_v40 = vpack.c.bf16 %v294_v38, %v294_v38  ;;  %v296_v41 = vpop.f32.mrb[5].mxu0 }
 0x1ce   :  { %v297_v42 = vpop.f32.mrb[6].mxu0 }
 0x1cf   :  { %v298_v43 = vpop.f32.mrb[7].mxu0  ;;  %1222 = vmatmul.mubr.msk.bf16.vlgmr.msra.gmra.mrb[4].mxu1 %vm313_vm2, %v300_v40  ;;  %v558_v40 = vsub.s32 1, %v1527_v50 }
 0x1d0   :  { %1226 = vmatpush3.bf16.msra.mxu1 %v1338_v39  ;;  %1229 = vmatprep.mubr.msk.bf16.mxu1 %vm1380_vm1, %v1379_v12 }
 0x1d1   :  { %1227 = vmatprep.subr.bf16.mxu1 %v1379_v12  ;;  %v559_v41 = vrot.slane %v1532_v54, %v558_v40 }
 0x1d4   :  { %1228 = vmatpush3.bf16.msra.mxu1 %v1339_v44 }
 0x1d5   :  { %1239 = vmatprep.subr.bf16.mxu1 %v1379_v12 }
 0x1d7   :  { %1230 = vmatmul.mubr.msk.bf16.vlgmr.msra.gmra.mrb[8].mxu1 %vm102_vm0, %v359_v47 }
 0x1d8   :  { %1241 = vmatprep.mubr.msk.bf16.mxu1 %vm1380_vm1, %v1379_v12 }
 0x2a2   :  { %v1524_v49 = vpop.f32.mrb[4].mxu1 }
 0x2a3   :  { %v1223_v51 = vpop.f32.mrb[5].mxu1 }
 0x2a4   :  { %v354_v52 = vpop.f32.mrb[6].mxu1 }
 0x2a5   :  { %v1224_v53 = vpop.f32.mrb[7].mxu1 }
 0x2aa   :  { %v417_v57 = vpop.f32.mrb[8].mxu1 }
 0x2ab   :  { %v1231_v58 = vpop.f32.mrb[9].mxu1  ;;  %v418_v60 = vadd.f32 %v417_v57, %v367_v56 }
 0x2ac   :  { %v420_v59 = vpop.f32.mrb[10].mxu1 }
 0x2ad   :  { %v421_v61 = vadd.f32 %v420_v59, %v367_v56  ;;  %v1232_v62 = vpop.f32.mrb[11].mxu1 }
 0x2af   :  { %v424_v63 = vpack.c.bf16 %v421_v61, %v418_v60 }
 0x2b1   :  { %426 = vrot.lane.b32.xlu0 %v424_v63, %s1381_s19 }
 0x323   :  { %v427_v0 = vpop.permute.xlu0 %426 }
 0x324   :  { %v432_v1 = vsel %vm102_vm0, %v427_v0, 0 }
 0x325   :  { %1234 = vmatpush3.bf16.xpose.msra.mxu0 %v432_v1 }
 0x326   :  { %1245 = vmatprep.subr.bf16.mxu0 %v1379_v12 }
 0x32c   :  { %1236 = vmatmul.mubr.msk.bf16.vlgmr.msra.gmra.mrb[8].mxu0 %vm102_vm0, %v424_v63 }
 0x32d   :  { %1249 = vmatprep.mubr.msk.bf16.mxu0 %vm1380_vm1, %v1379_v12  ;;  %1246 = vmatpush3.bf16.msra.mxu0 %v1340_v25  ;;  %v1344_v25 = vld [vmem:[%s1707_s5] sm:$0xff]  }
 0x32e   :  { %1247 = vmatprep.subr.bf16.mxu0 %v1379_v12 }
 0x331   :  { %1248 = vmatpush3.bf16.msra.mxu0 %v1341_v34 }
 0x332   :  { %1261 = vmatprep.subr.bf16.mxu0 %v1379_v12 }
 0x3ff   :  { %v468_v2 = vpop.f32.mrb[8].mxu0 }
 0x400   :  { %v475_v4 = vmul.f32 0.17677669, %v468_v2  ;;  %v1237_v5 = vpop.f32.mrb[9].mxu0 }
 0x401   :  { %v471_v6 = vpop.f32.mrb[10].mxu0 }
 0x402   :  { %v476_v8 = vmul.f32 0.17677669, %v471_v6  ;;  %v1238_v9 = vpop.f32.mrb[11].mxu0  ;;  %v479_v10 = vadd.f32 %v477_v3, %v475_v4  ;;  %v1343_v4 = vld [vmem:[%s1706_s4 + $0x8] sm:$0xff]  }
 0x404   :  { %v481_v11 = vsel %vm313_vm2, %v479_v10, -inf  ;;  %v480_v13 = vadd.f32 %v478_v7, %v476_v8 }
 0x405   :  { %482 = vmax.xlane.f32.xlu0 %v481_v11  ;;  %v647_v11 = vsub.s32 2, %v1527_v50 }
 0x406   :  { %v484_v14 = vsel %vm313_vm2, %v480_v13, -inf }
 0x407   :  { %485 = vmax.xlane.f32.xlu1 %v484_v14  ;;  %v648_v14 = vrot.slane %v1532_v54, %v647_v11 }
 0x492   :  { %v483_v15 = vpop.xlane.xlu0 %482 }
 0x493   :  { %v487_v16 = vsub.f32 %v479_v10, %v483_v15 }
 0x494   :  { %v486_v17 = vpop.xlane.xlu1 %485 }
 0x495   :  { %v489_v18 = vmul.f32 1.442695, %v487_v16  ;;  %v488_v19 = vsub.f32 %v480_v13, %v486_v17  ;;  %v653_v16 = vsub.s32 3, %v1527_v50 }
 0x497   :  { %1358 = vpow2.f32 %v489_v18  ;;  %v491_v20 = vmul.f32 1.442695, %v488_v19 }
 0x499   :  { %1360 = vpow2.f32 %v491_v20  ;;  %v654_v20 = vrot.slane %v1532_v54, %v653_v16 }
 0x4a1   :  { %v1359_v21 = vpop.eup %1358 }
 0x4a2   :  { %v493_v22 = vsel %vm313_vm2, %v1359_v21, 0.0 }
 0x4a3   :  { %v1361_v23 = vpop.eup %1360  ;;  %494 = vadd.xlane.f32.xlu1 %v493_v22 }
 0x4a4   :  { %v496_v24 = vsel %vm313_vm2, %v1361_v23, 0.0 }
 0x4a7   :  { %497 = vadd.xlane.f32.xlu1 %v496_v24 }
 0x4b8   :  { %504 = vrot.lane.b32.xlu1 %v424_v63, %s1382_s1 }
 0x530   :  { %v495_v26 = vpop.xlane.xlu1 %494 }
 0x531   :  { %1362 = vrcp.f32 %v495_v26  ;;  %v1345_v26 = vld [vmem:[%s1707_s5 + $0x8] sm:$0xff]  }
 0x534   :  { %v498_v27 = vpop.xlane.xlu1 %497 }
 0x535   :  { %1364 = vrcp.f32 %v498_v27  ;;  %v1346_v27 = vld [vmem:[%s1707_s5 + $0x10] sm:$0xff]  }
 0x538   :  { %v505_v28 = vpop.permute.xlu1 %504 }
 0x539   :  { %1240 = vmatpush3.bf16.msra.mxu1 %v505_v28  ;;  %v1347_v28 = vld [vmem:[%s1707_s5 + $0x18] sm:$0xff]  }
 0x53a   :  { %1253 = vmatprep.subr.bf16.mxu1 %v1379_v12 }
 0x53b   :  { %v1363_v29 = vpop.eup %1362 }
 0x53c   :  { %v501_v31 = vmul.f32 %v1363_v29, %v1359_v21  ;;  %v1348_v29 = vld [vmem:[%s1707_s5 + $0x20] sm:$0xff]  }
 0x53f   :  { %v1365_v30 = vpop.eup %1364 }
 0x540   :  { %v502_v32 = vmul.f32 %v1365_v30, %v1361_v23  ;;  %v1349_v30 = vld [vmem:[%s1707_s5 + $0x28] sm:$0xff]  }
 0x542   :  { %v503_v33 = vpack.c.bf16 %v502_v32, %v501_v31  ;;  %v1350_v31 = vld [vmem:[%s1707_s5 + $0x30] sm:$0xff]   ;;  %v1351_v32 = vld [vmem:[%s1707_s5 + $0x38] sm:$0xff]  }
 0x544   :  { %1242 = vmatmul.mubr.msk.bf16.vlgmr.msra.gmra.mrb[12].mxu1 %vm313_vm2, %v503_v33  ;;  %v664_v33 = vsub.s32 4, %v1527_v50 }
 0x545   :  { %1257 = vmatprep.mubr.msk.bf16.mxu1 %vm1380_vm1, %v1379_v12 }
 0x546   :  { %v665_v34 = vrot.slane %v1532_v54, %v664_v33  ;;  %v894_v33 = vand.u32 127, %v303_v48 }
 0x617   :  { %v544_v35 = vpop.f32.mrb[12].mxu1 }
 0x618   :  { %v1243_v36 = vpop.f32.mrb[13].mxu1 }
 0x619   :  { %v547_v37 = vpop.f32.mrb[14].mxu1 }
 0x61a   :  { %v551_v38 = vpack.c.bf16 %v547_v37, %v544_v35  ;;  %v1244_v39 = vpop.f32.mrb[15].mxu1 }
 0x61c   :  { %1250 = vmatmul.mubr.msk.bf16.vlgmr.msra.gmra.mrb[12].mxu0 %vm102_vm0, %v551_v38 }
 0x61d   :  { %1277 = vmatprep.mubr.msk.bf16.mxu0 %vm1380_vm1, %v1379_v12  ;;  %1262 = vmatpush3.bf16.msra.mxu0 %v1344_v25 }
 0x61e   :  { %1263 = vmatprep.subr.bf16.mxu0 %v1379_v12 }
 0x621   :  { %1264 = vmatpush3.bf16.msra.mxu0 %v1345_v26 }
 0x622   :  { %1265 = vmatprep.subr.bf16.mxu0 %v1379_v12 }
 0x625   :  { %1266 = vmatpush3.bf16.msra.mxu0 %v1346_v27 }
 0x626   :  { %1267 = vmatprep.subr.bf16.mxu0 %v1379_v12 }
 0x629   :  { %1268 = vmatpush3.bf16.msra.mxu0 %v1347_v28 }
 0x62a   :  { %1269 = vmatprep.subr.bf16.mxu0 %v1379_v12 }
 0x62d   :  { %1270 = vmatpush3.bf16.msra.mxu0 %v1348_v29 }
 0x62e   :  { %1271 = vmatprep.subr.bf16.mxu0 %v1379_v12 }
 0x631   :  { %1272 = vmatpush3.bf16.msra.mxu0 %v1349_v30 }
 0x632   :  { %1273 = vmatprep.subr.bf16.mxu0 %v1379_v12 }
 0x635   :  { %1274 = vmatpush3.bf16.msra.mxu0 %v1350_v31 }
 0x636   :  { %1275 = vmatprep.subr.bf16.mxu0 %v1379_v12 }
 0x639   :  { %1276 = vmatpush3.bf16.msra.mxu0 %v1351_v32  ;;  %v880_v32 = vsub.s32 6, %v1527_v50 }
 0x6ef   :  { %v609_v42 = vpop.f32.mrb[12].mxu0 }
 0x6f0   :  { %v610_v43 = vadd.f32 %v609_v42, %v559_v41  ;;  %v1251_v44 = vpop.f32.mrb[13].mxu0 }
 0x6f1   :  { %v612_v47 = vpop.f32.mrb[14].mxu0 }
 0x6f2   :  { %v613_v51 = vadd.f32 %v612_v47, %v559_v41  ;;  %v1252_v52 = vpop.f32.mrb[15].mxu0  ;;  %v616_v53 = vadd.f32 %v610_v43, %v1510_v45 }
 0x6f4   :  { %v618_v56 = vsel %vm102_vm0, %v616_v53, 0.0  ;;  %v617_v57 = vadd.f32 %v613_v51, %v1515_v46  ;;  %v1342_v46 = vld [vmem:[%s1706_s4] sm:$0xff]  }
 0x6f5   :  { %619 = vadd.xlane.f32.xlu1 %v618_v56  ;;  %1254 = vmatpush3.bf16.msra.mxu1 %v1342_v46 }
 0x6f6   :  { %v621_v58 = vsel %vm102_vm0, %v617_v57, 0.0  ;;  %1255 = vmatprep.subr.bf16.mxu1 %v1379_v12 }
 0x6f7   :  { %622 = vadd.xlane.f32.xlu0 %v621_v58 }
 0x6f9   :  { %1256 = vmatpush3.bf16.msra.mxu1 %v1343_v4 }
 0x6fa   :  { %1281 = vmatprep.subr.bf16.mxu1 %v1379_v12 }
 0x782   :  { %v620_v59 = vpop.xlane.xlu1 %619 }
 0x783   :  { %v625_v60 = vmul.f32 0.03125, %v620_v59 }
 0x784   :  { %v623_v61 = vpop.xlane.xlu0 %622 }
 0x785   :  { %v627_v62 = vsub.f32 %v616_v53, %v625_v60  ;;  %v626_v63 = vmul.f32 0.03125, %v623_v61 }
 0x787   :  { %v628_v0 = vsub.f32 %v617_v57, %v626_v63  ;;  %v629_v1 = vmul.f32 %v627_v62, %v627_v62 }
 0x789   :  { %v631_v2 = vsel %vm102_vm0, %v629_v1, 0.0  ;;  %v630_v3 = vmul.f32 %v628_v0, %v628_v0 }
 0x78a   :  { %632 = vadd.xlane.f32.xlu0 %v631_v2 }
 0x78b   :  { %v634_v45 = vsel %vm102_vm0, %v630_v3, 0.0 }
 0x78e   :  { %635 = vadd.xlane.f32.xlu0 %v634_v45  ;;  %v759_v45 = vsub.s32 5, %v1527_v50 }
 0x790   :  { %v760_v46 = vrot.slane %v1532_v54, %v759_v45 }
 0x817   :  { %v633_v5 = vpop.xlane.xlu0 %632 }
 0x818   :  { %v637_v6 = vmul.f32 0.03125, %v633_v5 }
 0x81a   :  { %v639_v7 = vadd.f32 1e-12, %v637_v6 }
 0x81b   :  { %v636_v8 = vpop.xlane.xlu0 %635 }
 0x81c   :  { %1366 = vrsqrt.f32 %v639_v7  ;;  %v638_v9 = vmul.f32 0.03125, %v636_v8 }
 0x81e   :  { %v640_v10 = vadd.f32 1e-12, %v638_v9 }
 0x820   :  { %1368 = vrsqrt.f32 %v640_v10 }
 0x826   :  { %v1367_v13 = vpop.eup %1366 }
 0x827   :  { %v643_v15 = vmul.f32 %v1367_v13, %v627_v62 }
 0x829   :  { %v649_v18 = vmul.f32 %v648_v14, %v643_v15 }
 0x82a   :  { %v1369_v17 = vpop.eup %1368 }
 0x82b   :  { %v644_v19 = vmul.f32 %v1369_v17, %v628_v0  ;;  %v1592_v22 = vadd.f32 %v654_v20, %v649_v18 }
 0x82d   :  { %v650_v21 = vmul.f32 %v648_v14, %v644_v19 }
 0x82f   :  { %v1594_v23 = vadd.f32 %v654_v20, %v650_v21 }
 0x831   :  { %v657_v24 = vpack.c.bf16 %v1594_v23, %v1592_v22 }
 0x833   :  { %1258 = vmatmul.mubr.msk.bf16.vlgmr.msra.gmra.mrb[16].mxu1 %vm102_vm0, %v657_v24 }
 0x834   :  { %1283 = vmatprep.mubr.msk.bf16.mxu1 %vm1380_vm1, %v1379_v12 }
 0x906   :  { %v715_v35 = vpop.f32.mrb[16].mxu1 }
 0x907   :  { %v716_v36 = vadd.f32 %v715_v35, %v665_v34  ;;  %v1259_v37 = vpop.f32.mrb[17].mxu1 }
 0x908   :  { %v718_v38 = vpop.f32.mrb[18].mxu1  ;;  %v881_v37 = vrot.slane %v1532_v54, %v880_v32 }
 0x909   :  { %v724_v39 = vmul.f32 0.044715, %v716_v36  ;;  %v719_v41 = vadd.f32 %v718_v38, %v665_v34  ;;  %v1260_v42 = vpop.f32.mrb[19].mxu1  ;;  %v722_v62 = vmul.f32 0.5, %v716_v36  ;;  %v895_v34 = vmul.u32 8, %v1527_v50 }
 0x90a   :  { %v886_v38 = vsub.s32 7, %v1527_v50 }
 0x90b   :  { %v726_v43 = vmul.f32 %v724_v39, %v716_v36  ;;  %v725_v44 = vmul.f32 0.044715, %v719_v41  ;;  %v723_v63 = vmul.f32 0.5, %v719_v41  ;;  %vm896_vm3 = vcmp.eq.s32.totalorder %v894_v33, %v895_v34 }
 0x90c   :  { %vm898_vm5 = vmand %vm896_vm3, %vm897_vm4 }
 0x90d   :  { %v728_v47 = vmul.f32 %v726_v43, %v716_v36  ;;  %v727_v51 = vmul.f32 %v725_v44, %v719_v41  ;;  %v887_v43 = vrot.slane %v1532_v54, %v886_v38  ;;  %v1353_v54 = vld [vmem:[%s1708_s10 + $0x8] sm:$0xff]  }
 0x90f   :  { %v730_v52 = vadd.f32 %v728_v47, %v716_v36  ;;  %v729_v53 = vmul.f32 %v727_v51, %v719_v41  ;;  %v899_v51 = vsel %vm898_vm5, 1.0, %v1379_v12 }
 0x911   :  { %v732_v56 = vmul.f32 0.7978846, %v730_v52  ;;  %v731_v57 = vadd.f32 %v729_v53, %v719_v41  ;;  %v900_v53 = vpack.c.bf16 %v899_v51, %v899_v51 }
 0x913   :  { %1370 = vtanh.f32 %v732_v56  ;;  %v733_v58 = vmul.f32 0.7978846, %v731_v57  ;;  %v1352_v56 = vld [vmem:[%s1708_s10] sm:$0xff]   ;;  %v46_v57 = vld [vmem:[%s1703_s12 + $0x8] sm:$0xff] }
 0x914   :  { %v952_v45 = vrot.slane %v46_v57, %v558_v40 }
 0x915   :  { %1372 = vtanh.f32 %v733_v58 }
 0x91d   :  { %v1371_v59 = vpop.eup %1370 }
 0x91e   :  { %v736_v60 = vadd.f32 1.0, %v1371_v59  ;;  %v1354_v59 = vld [vmem:[%s1709_s11 + $0x10] sm:$0xff]  }
 0x91f   :  { %v1373_v61 = vpop.eup %1372 }
 0x920   :  { %v737_v0 = vadd.f32 1.0, %v1373_v61  ;;  %v738_v1 = vmul.f32 %v736_v60, %v722_v62  ;;  %v306_v60 = vrot.slane %v46_v57, %v305_v55  ;;  %v1356_v55 = vld [vmem:[%s1709_s11] sm:$0xff]  }
 0x922   :  { %v739_v2 = vmul.f32 %v737_v0, %v723_v63 }
 0x924   :  { %v740_v3 = vpack.c.bf16 %v739_v2, %v738_v1  ;;  %v1355_v1 = vld [vmem:[%s1709_s11 + $0x18] sm:$0xff]   ;;  %v352_v2 = vadd.f32 %v1524_v49, %v306_v60  ;;  %v1357_v49 = vld [vmem:[%s1709_s11 + $0x8] sm:$0xff]  }
 0x926   :  { %1278 = vmatmul.mubr.bf16.vlgmr.msra.gmra.mrb[16].mxu0 %v740_v3  ;;  %v1017_v3 = vpack.c.bf16 %v352_v2, %v352_v2 }
 0x9f9   :  { %v843_v4 = vpop.f32.mrb[16].mxu0 }
 0x9fa   :  { %v844_v5 = vadd.f32 %v843_v4, %v760_v46  ;;  %v1279_v6 = vpop.f32.mrb[17].mxu0 }
 0x9fb   :  { %v846_v7 = vpop.f32.mrb[18].mxu0 }
 0x9fc   :  { %v847_v8 = vadd.f32 %v846_v7, %v760_v46  ;;  %v1280_v9 = vpop.f32.mrb[19].mxu0  ;;  %v850_v10 = vadd.f32 %v844_v5, %v1592_v22 }
 0x9fe   :  { %v852_v13 = vsel %vm102_vm0, %v850_v10, 0.0  ;;  %v851_v14 = vadd.f32 %v847_v8, %v1594_v23 }
 0x9ff   :  { %853 = vadd.xlane.f32.xlu0 %v852_v13 }
 0xa00   :  { %v855_v15 = vsel %vm102_vm0, %v851_v14, 0.0 }
 0xa03   :  { %856 = vadd.xlane.f32.xlu0 %v855_v15 }
 0xa8c   :  { %v854_v16 = vpop.xlane.xlu0 %853 }
 0xa8d   :  { %v858_v17 = vmul.f32 0.03125, %v854_v16 }
 0xa8f   :  { %v860_v18 = vsub.f32 %v850_v10, %v858_v17 }
 0xa90   :  { %v857_v19 = vpop.xlane.xlu0 %856 }
 0xa91   :  { %v859_v20 = vmul.f32 0.03125, %v857_v19  ;;  %v862_v21 = vmul.f32 %v860_v18, %v860_v18 }
 0xa93   :  { %v861_v24 = vsub.f32 %v851_v14, %v859_v20  ;;  %v864_v25 = vsel %vm102_vm0, %v862_v21, 0.0  ;;  %v1131_v14 = vrot.slane %v46_v57, %v647_v11 }
 0xa94   :  { %865 = vadd.xlane.f32.xlu0 %v864_v25 }
 0xa95   :  { %v863_v26 = vmul.f32 %v861_v24, %v861_v24 }
 0xa97   :  { %v867_v22 = vsel %vm102_vm0, %v863_v26, 0.0 }
 0xa98   :  { %868 = vadd.xlane.f32.xlu0 %v867_v22 }
 0xb21   :  { %v866_v27 = vpop.xlane.xlu0 %865 }
 0xb22   :  { %v870_v23 = vmul.f32 0.03125, %v866_v27 }
 0xb24   :  { %v872_v28 = vadd.f32 1e-12, %v870_v23 }
 0xb25   :  { %v869_v29 = vpop.xlane.xlu0 %868 }
 0xb26   :  { %1374 = vrsqrt.f32 %v872_v28  ;;  %v871_v30 = vmul.f32 0.03125, %v869_v29 }
 0xb28   :  { %v873_v31 = vadd.f32 1e-12, %v871_v30 }
 0xb2a   :  { %1376 = vrsqrt.f32 %v873_v31 }
 0xb30   :  { %v1375_v35 = vpop.eup %1374 }
 0xb31   :  { %v876_v36 = vmul.f32 %v1375_v35, %v860_v18 }
 0xb33   :  { %v882_v42 = vmul.f32 %v881_v37, %v876_v36 }
 0xb34   :  { %v1377_v39 = vpop.eup %1376 }
 0xb35   :  { %v877_v41 = vmul.f32 %v1377_v39, %v861_v24  ;;  %v888_v47 = vadd.f32 %v887_v43, %v882_v42 }
 0xb37   :  { %v883_v44 = vmul.f32 %v881_v37, %v877_v41 }
 0xb39   :  { %v889_v48 = vadd.f32 %v887_v43, %v883_v44 }
 0xb3b   :  { %v890_v52 = vpack.c.bf16 %v889_v48, %v888_v47 }
 0xb3d   :  { %1282 = vmatpush3.bf16.msra.mxu1 %v890_v52 }
 0xb3e   :  { %1287 = vmatprep.subr.bf16.mxu1 %v1379_v12 }
 0xb40   :  { %1284 = vmatmul.mubr.msk.bf16.vlgmr.msra.gmra.mrb[20].mxu1 %vm313_vm2, %v900_v53 }
 0xb41   :  { %1288 = vmatpush3.bf16.msra.mxu1 %v1352_v56  ;;  %1291 = vmatprep.mubr.msk.bf16.mxu1 %vm1380_vm1, %v1379_v12 }
 0xb42   :  { %1289 = vmatprep.subr.bf16.mxu1 %v1379_v12 }
 0xb45   :  { %1290 = vmatpush3.bf16.msra.mxu1 %v1353_v54 }
 0xb46   :  { %1295 = vmatprep.subr.bf16.mxu1 %v1379_v12 }
 0xc13   :  { %v938_v58 = vpop.f32.mrb[20].mxu1 }
 0xc14   :  { %v944_v61 = vpack.c.bf16 %v938_v58, %v938_v58  ;;  %v1285_v62 = vpop.f32.mrb[21].mxu1 }
 0xc15   :  { %v941_v63 = vpop.f32.mrb[22].mxu1 }
 0xc16   :  { %1292 = vmatmul.mubr.msk.bf16.vlgmr.msra.gmra.mrb[24].mxu1 %vm102_vm0, %v944_v61  ;;  %v1286_v0 = vpop.f32.mrb[23].mxu1 }
 0xc17   :  { %1296 = vmatpush3.bf16.msra.mxu1 %v1354_v59  ;;  %1299 = vmatprep.mubr.msk.bf16.mxu1 %vm1380_vm1, %v1379_v12 }
 0xc18   :  { %1297 = vmatprep.subr.bf16.mxu1 %v1379_v12 }
 0xc1b   :  { %1298 = vmatpush3.bf16.msra.mxu1 %v1355_v1 }
 0xc1c   :  { %1303 = vmatprep.subr.bf16.mxu1 %v1379_v12 }
 0xc1e   :  { %1300 = vmatmul.mubr.msk.bf16.vlgmr.msra.gmra.mrb[28].mxu1 %vm102_vm0, %v1017_v3 }
 0xc1f   :  { %1304 = vmatpush3.bf16.msra.mxu1 %v1356_v55  ;;  %1307 = vmatprep.mubr.msk.bf16.mxu1 %vm1380_vm1, %v1379_v12 }
 0xc20   :  { %1305 = vmatprep.subr.bf16.mxu1 %v1379_v12 }
 0xc23   :  { %1306 = vmatpush3.bf16.msra.mxu1 %v1357_v49 }
 0xce9   :  { %v1002_v46 = vpop.f32.mrb[24].mxu1 }
 0xcea   :  { %v1003_v4 = vadd.f32 %v1002_v46, %v952_v45  ;;  %v1293_v5 = vpop.f32.mrb[25].mxu1 }
 0xceb   :  { %v1005_v6 = vpop.f32.mrb[26].mxu1 }
 0xcec   :  { %v1016_v7 = vpack.c.bf16 %v1003_v4, %v1003_v4  ;;  %v1294_v8 = vpop.f32.mrb[27].mxu1 }
 0xcee   :  { %1308 = vmatmul.mubr.msk.bf16.vlgmr.msra.gmra.mrb[32].mxu1 %vm102_vm0, %v1016_v7 }
 0xcf1   :  { %v1067_v9 = vpop.f32.mrb[28].mxu1 }
 0xcf2   :  { %v1301_v10 = vpop.f32.mrb[29].mxu1 }
 0xcf3   :  { %v1070_v13 = vpop.f32.mrb[30].mxu1 }
 0xcf4   :  { %v1302_v12 = vpop.f32.mrb[31].mxu1 }
 0xdc1   :  { %v1122_v15 = vpop.f32.mrb[32].mxu1 }
 0xdc2   :  { %v1123_v16 = vadd.f32 %v1122_v15, %v1067_v9  ;;  %v1309_v17 = vpop.f32.mrb[33].mxu1 }
 0xdc3   :  { %v1125_v18 = vpop.f32.mrb[34].mxu1 }
 0xdc4   :  { %v1132_v40 = vadd.f32 %v1131_v14, %v1123_v16  ;;  %v1310_v19 = vpop.f32.mrb[35].mxu1 }
 0xdc6   :  { %1133 = vst [vmem:[%s1710_s13] sm:$0xff] %v1132_v40 }

</bundles_post_ra>
